<compile_context>
chip_gen: v7x
topology: tpu7x:2x2x1
jax: 0.10.0
libtpu: 0.0.40
codegen_flags: <defaults>
</compile_context>

<pallas_src>
import functools

import jax
import jax.numpy as jnp
from jax.experimental import pallas as pl
from jax.experimental.pallas import tpu as pltpu

HEAD_PANEL = 128  # one full lane group per head (mu panel | sigma panel)


def _softplus(x):
    # numerically stable softplus: max(x,0) + log1p(exp(-|x|))
    return jnp.maximum(x, 0.0) + jnp.log1p(jnp.exp(-jnp.abs(x)))


def _round_up(n, m):
    return ((n + m - 1) // m) * m


def actor_kernel(x_ref,
                 w1_ref, b1_ref,
                 w2_ref, b2_ref,
                 wh_ref, bh_ref,
                 out_ref,
                 *, panel):
    """One batch tile: two hidden tanh layers + fused (mu-panel | sigma-panel) head."""
    mxu_dtype = w1_ref.dtype          # bf16 (default) or f32 MXU operands

    # fc1 + tanh   (accumulate in f32; biases/activations stay f32)
    h1 = jnp.tanh(
        jnp.dot(x_ref[...], w1_ref[...], preferred_element_type=jnp.float32)
        + b1_ref[...])

    # fc2 + tanh
    h2 = jnp.tanh(
        jnp.dot(h1.astype(mxu_dtype), w2_ref[...],
                preferred_element_type=jnp.float32) + b2_ref[...])

    # fused head: y[:, :panel] -> mu logits (padded), y[:, panel:] -> sigma logits (padded)
    y = (jnp.dot(h2.astype(mxu_dtype), wh_ref[...],
                 preferred_element_type=jnp.float32) + bh_ref[...])

    # Static slices at the 128-lane vreg boundary -> each activation runs on
    # exactly one panel; both stores are full-lane (unmasked) vst.
    out_ref[:, :panel] = jnp.tanh(y[:, :panel]).astype(out_ref.dtype)
    out_ref[:, panel:] = _softplus(y[:, panel:]).astype(out_ref.dtype)


def prepare_params(params, *, mxu_dtype=jnp.bfloat16, panel=HEAD_PANEL):
    """One-time prep: fuse + zero-pad the two heads to 128-lane panels, cast dtypes.

    Input params: (in, out)-shaped weights and (1, out)-shaped biases
    (i.e. transposed vs. PyTorch), keys: w1,b1,w2,b2,wmu,bmu,wsig,bsig.
    Returns a dict of device-ready arrays for actor_forward.
    """
    action_dim = params["wmu"].shape[1]
    assert action_dim <= panel, "action_dim must fit in one 128-lane panel"

    def pad_cols(a):
        return jnp.pad(a, ((0, 0), (0, panel - a.shape[1])))

    wh = jnp.concatenate([pad_cols(params["wmu"]), pad_cols(params["wsig"])], axis=1)
    bh = jnp.concatenate([pad_cols(params["bmu"]), pad_cols(params["bsig"])], axis=1)

    return dict(
        w1=params["w1"].astype(mxu_dtype),
        b1=params["b1"].astype(jnp.float32),
        w2=params["w2"].astype(mxu_dtype),
        b2=params["b2"].astype(jnp.float32),
        wh=wh.astype(mxu_dtype),               # (hidden, 2*panel)
        bh=bh.astype(jnp.float32),             # (1, 2*panel)
    )


def actor_forward(x, prepped, action_dim, *, tb=2048):
    """x: (B, state_dim) float32.  prepped: output of prepare_params.

    Returns (mu, sigma), each (B, action_dim) float32.
    """
    B, state_dim = x.shape
    hidden = prepped["w1"].shape[1]
    out_dim = prepped["wh"].shape[1]           # 2 * panel
    panel = out_dim // 2
    mxu_dtype = prepped["w1"].dtype

    x_in = x.astype(mxu_dtype)

    # ---- batch tiling -------------------------------------------------------
    # tb multiple of 16 (covers bf16 sublane packing); no padding of x — the
    # last grid block may be partial (OOB reads padded, OOB writes masked).
    tb = max(16, min(_round_up(tb, 16), _round_up(B, 16)))
    if B >= 32:
        # ensure >= 2 grid steps so "parallel" actually uses both TCs on v7x
        tb = min(tb, _round_up(pl.cdiv(B, 2), 16))
    grid = (pl.cdiv(B, tb),)

    kernel = functools.partial(actor_kernel, panel=panel)

    # Weights/biases map to the same block every grid step -> VMEM-resident.
    in_specs = [
        pl.BlockSpec((tb, state_dim), lambda i: (i, 0)),      # x: batch-tiled
        pl.BlockSpec((state_dim, hidden), lambda i: (0, 0)),  # w1
        pl.BlockSpec((1, hidden), lambda i: (0, 0)),          # b1
        pl.BlockSpec((hidden, hidden), lambda i: (0, 0)),     # w2
        pl.BlockSpec((1, hidden), lambda i: (0, 0)),          # b2
        pl.BlockSpec((hidden, out_dim), lambda i: (0, 0)),    # [wmu pad | wsig pad]
        pl.BlockSpec((1, out_dim), lambda i: (0, 0)),         # [bmu pad | bsig pad]
    ]
    out_specs = pl.BlockSpec((tb, out_dim), lambda i: (i, 0))

    out = pl.pallas_call(
        kernel,
        out_shape=jax.ShapeDtypeStruct((B, out_dim), jnp.float32),
        grid=grid,
        in_specs=in_specs,
        out_specs=out_specs,
        compiler_params=pltpu.CompilerParams(
            dimension_semantics=("parallel",),   # 2-TC sharding on v7x
            vmem_limit_bytes=32 << 20),          # headroom if tb is bumped
    )(x_in, prepped["w1"], prepped["b1"], prepped["w2"], prepped["b2"],
      prepped["wh"], prepped["bh"])

    mu = out[:, :action_dim]
    sigma = out[:, panel:panel + action_dim]
    return mu, sigma


def init_params(key, state_dim, action_dim, hidden=64):
    """Deterministic init mimicking nn.Linear default (uniform +/- 1/sqrt(fan_in))."""
    def linear(k, fan_in, fan_out):
        kw, kb = jax.random.split(k)
        bound = 1.0 / jnp.sqrt(fan_in)
        w = jax.random.uniform(kw, (fan_in, fan_out), jnp.float32, -bound, bound)
        b = jax.random.uniform(kb, (1, fan_out), jnp.float32, -bound, bound)
        return w, b

    k1, k2, k3, k4 = jax.random.split(key, 4)
    w1, b1 = linear(k1, state_dim, hidden)
    w2, b2 = linear(k2, hidden, hidden)
    wmu, bmu = linear(k3, hidden, action_dim)
    wsig, bsig = linear(k4, hidden, action_dim)
    return dict(w1=w1, b1=b1, w2=w2, b2=b2,
                wmu=wmu, bmu=bmu, wsig=wsig, bsig=bsig)


def actor_reference(x, p):
    h1 = jnp.tanh(x @ p["w1"] + p["b1"])
    h2 = jnp.tanh(h1 @ p["w2"] + p["b2"])
    mu = jnp.tanh(h2 @ p["wmu"] + p["bmu"])
    sigma = jax.nn.softplus(h2 @ p["wsig"] + p["bsig"])
    return mu, sigma


if __name__ == "__main__":
    # Small, module-consistent shapes: batch=8 states of dim 32, 8-dim action space.
    batch, state_dim, action_dim = 8, 32, 8

    key = jax.random.PRNGKey(0)
    kx, kp = jax.random.split(key)
    x = jax.random.normal(kx, (batch, state_dim), jnp.float32)
    params = init_params(kp, state_dim, action_dim)

    mu_ref, sigma_ref = actor_reference(x, params)

    # f32 MXU path: exact match vs pure-JAX reference (also exercises the
    # partial last block: B=8 < tb=16).
    prepped32 = prepare_params(params, mxu_dtype=jnp.float32)
    mu32, sg32 = jax.block_until_ready(actor_forward(x, prepped32, action_dim))
    assert jnp.allclose(mu32, mu_ref, atol=1e-5), "mu mismatch (f32 path)"
    assert jnp.allclose(sg32, sigma_ref, atol=1e-5), "sigma mismatch (f32 path)"

    # bf16-MXU path (default, v6e/v7x throughput): loose tolerance vs f32 ref.
    prepped16 = prepare_params(params)
    mu16, sg16 = jax.block_until_ready(actor_forward(x, prepped16, action_dim))
    assert jnp.allclose(mu16, mu_ref, atol=3e-2), "mu mismatch (bf16 path)"
    assert jnp.allclose(sg16, sigma_ref, atol=3e-2), "sigma mismatch (bf16 path)"

    print("KERNEL_OK")
</pallas_src>

<mosaic_0001>
module attributes {stable_mosaic.version = 11 : i64} {
  func.func @actor_kernel(%arg0: i32, %arg1: memref<16x32xf32, #tpu.memory_space<vmem>>, %arg2: memref<32x64xf32, #tpu.memory_space<vmem>>, %arg3: memref<1x64xf32, #tpu.memory_space<vmem>>, %arg4: memref<64x64xf32, #tpu.memory_space<vmem>>, %arg5: memref<1x64xf32, #tpu.memory_space<vmem>>, %arg6: memref<64x256xf32, #tpu.memory_space<vmem>>, %arg7: memref<1x256xf32, #tpu.memory_space<vmem>>, %arg8: memref<16x256xf32, #tpu.memory_space<vmem>>) attributes {dimension_semantics = [#tpu.dimension_semantics<parallel>], iteration_bounds = array<i64: 1>, scalar_prefetch = 0 : i64, scratch_operands = 0 : i64, tpu.core_type = #tpu.core_type<tc>, window_params = [{transform_indices = @transform_0, window_bounds = array<i64: 16, 32>}, {pipeline_mode = #tpu.pipeline_mode<synchronous>, transform_indices = @transform_1, window_bounds = array<i64: 32, 64>}, {pipeline_mode = #tpu.pipeline_mode<synchronous>, transform_indices = @transform_2, window_bounds = array<i64: 1, 64>}, {pipeline_mode = #tpu.pipeline_mode<synchronous>, transform_indices = @transform_3, window_bounds = array<i64: 64, 64>}, {pipeline_mode = #tpu.pipeline_mode<synchronous>, transform_indices = @transform_4, window_bounds = array<i64: 1, 64>}, {pipeline_mode = #tpu.pipeline_mode<synchronous>, transform_indices = @transform_5, window_bounds = array<i64: 64, 256>}, {pipeline_mode = #tpu.pipeline_mode<synchronous>, transform_indices = @transform_6, window_bounds = array<i64: 1, 256>}, {transform_indices = @transform_7, window_bounds = array<i64: 16, 256>}]} {
    %c0 = arith.constant 0 : index
    %c0_0 = arith.constant 0 : index
    %0 = vector.load %arg1[%c0, %c0_0] : memref<16x32xf32, #tpu.memory_space<vmem>>, vector<16x32xf32>
    %c0_1 = arith.constant 0 : index
    %c0_2 = arith.constant 0 : index
    %1 = vector.load %arg2[%c0_1, %c0_2] : memref<32x64xf32, #tpu.memory_space<vmem>>, vector<32x64xf32>
    %cst = arith.constant dense<0.000000e+00> : vector<16x64xf32>
    %2 = tpu.matmul %0, %1, %cst {dimension_numbers = #tpu.dot_dimension_numbers<[1], [0], [0], [1], [0, 0, 1, 1], [], []>} : vector<16x32xf32>, vector<32x64xf32>, vector<16x64xf32> -> vector<16x64xf32>
    %c0_3 = arith.constant 0 : index
    %c0_4 = arith.constant 0 : index
    %3 = vector.load %arg3[%c0_3, %c0_4] : memref<1x64xf32, #tpu.memory_space<vmem>>, vector<1x64xf32>
    %4 = vector.broadcast %3 : vector<1x64xf32> to vector<16x64xf32>
    %5 = arith.addf %2, %4 : vector<16x64xf32>
    %6 = math.tanh %5 : vector<16x64xf32>
    %c0_5 = arith.constant 0 : index
    %c0_6 = arith.constant 0 : index
    %7 = vector.load %arg4[%c0_5, %c0_6] : memref<64x64xf32, #tpu.memory_space<vmem>>, vector<64x64xf32>
    %cst_7 = arith.constant dense<0.000000e+00> : vector<16x64xf32>
    %8 = tpu.matmul %6, %7, %cst_7 {dimension_numbers = #tpu.dot_dimension_numbers<[1], [0], [0], [1], [0, 0, 1, 1], [], []>} : vector<16x64xf32>, vector<64x64xf32>, vector<16x64xf32> -> vector<16x64xf32>
    %c0_8 = arith.constant 0 : index
    %c0_9 = arith.constant 0 : index
    %9 = vector.load %arg5[%c0_8, %c0_9] : memref<1x64xf32, #tpu.memory_space<vmem>>, vector<1x64xf32>
    %10 = vector.broadcast %9 : vector<1x64xf32> to vector<16x64xf32>
    %11 = arith.addf %8, %10 : vector<16x64xf32>
    %12 = math.tanh %11 : vector<16x64xf32>
    %c0_10 = arith.constant 0 : index
    %c0_11 = arith.constant 0 : index
    %13 = vector.load %arg6[%c0_10, %c0_11] : memref<64x256xf32, #tpu.memory_space<vmem>>, vector<64x256xf32>
    %cst_12 = arith.constant dense<0.000000e+00> : vector<16x256xf32>
    %14 = tpu.matmul %12, %13, %cst_12 {dimension_numbers = #tpu.dot_dimension_numbers<[1], [0], [0], [1], [0, 0, 1, 1], [], []>} : vector<16x64xf32>, vector<64x256xf32>, vector<16x256xf32> -> vector<16x256xf32>
    %c0_13 = arith.constant 0 : index
    %c0_14 = arith.constant 0 : index
    %15 = vector.load %arg7[%c0_13, %c0_14] : memref<1x256xf32, #tpu.memory_space<vmem>>, vector<1x256xf32>
    %16 = vector.broadcast %15 : vector<1x256xf32> to vector<16x256xf32>
    %17 = arith.addf %14, %16 : vector<16x256xf32>
    %18 = vector.extract_strided_slice %17 {offsets = [0, 0], sizes = [16, 128], strides = [1, 1]} : vector<16x256xf32> to vector<16x128xf32>
    %19 = math.tanh %18 : vector<16x128xf32>
    %c0_15 = arith.constant 0 : index
    %c0_16 = arith.constant 0 : index
    %20 = vector.load %arg8[%c0_15, %c0_16] : memref<16x256xf32, #tpu.memory_space<vmem>>, vector<16x128xf32>
    tpu.vector_store %arg8[%c0_15, %c0_16], %19 {strides = array<i32>} : memref<16x256xf32, #tpu.memory_space<vmem>>, vector<16x128xf32>,
    %21 = vector.extract_strided_slice %17 {offsets = [0, 128], sizes = [16, 128], strides = [1, 1]} : vector<16x256xf32> to vector<16x128xf32>
    %cst_17 = arith.constant 0.000000e+00 : f32
    %22 = vector.broadcast %cst_17 : f32 to vector<16x128xf32>
    %23 = arith.maximumf %21, %22 : vector<16x128xf32>
    %24 = math.absf %21 : vector<16x128xf32>
    %cst_18 = arith.constant 0.000000e+00 : f32
    %25 = vector.broadcast %cst_18 : f32 to vector<16x128xf32>
    %26 = arith.subf %25, %24 : vector<16x128xf32>
    %27 = math.exp %26 : vector<16x128xf32>
    %28 = math.log1p %27 : vector<16x128xf32>
    %29 = arith.addf %23, %28 : vector<16x128xf32>
    %c0_19 = arith.constant 0 : index
    %c128 = arith.constant 128 : index
    %30 = vector.load %arg8[%c0_19, %c128] : memref<16x256xf32, #tpu.memory_space<vmem>>, vector<16x128xf32>
    tpu.vector_store %arg8[%c0_19, %c128], %29 {strides = array<i32>} : memref<16x256xf32, #tpu.memory_space<vmem>>, vector<16x128xf32>,
    return
  }
  func.func @transform_0(%arg0: i32) -> (i32, i32) {
    %c0_i32 = arith.constant 0 : i32
    %c0_i32_0 = arith.constant 0 : i32
    return %arg0, %c0_i32 : i32, i32
  }
  func.func @transform_1(%arg0: i32) -> (i32, i32) {
    %c0_i32 = arith.constant 0 : i32
    %c0_i32_0 = arith.constant 0 : i32
    %c0_i32_1 = arith.constant 0 : i32
    return %c0_i32, %c0_i32_0 : i32, i32
  }
  func.func @transform_2(%arg0: i32) -> (i32, i32) {
    %c0_i32 = arith.constant 0 : i32
    %c0_i32_0 = arith.constant 0 : i32
    %c0_i32_1 = arith.constant 0 : i32
    return %c0_i32, %c0_i32_0 : i32, i32
  }
  func.func @transform_3(%arg0: i32) -> (i32, i32) {
    %c0_i32 = arith.constant 0 : i32
    %c0_i32_0 = arith.constant 0 : i32
    %c0_i32_1 = arith.constant 0 : i32
    return %c0_i32, %c0_i32_0 : i32, i32
  }
  func.func @transform_4(%arg0: i32) -> (i32, i32) {
    %c0_i32 = arith.constant 0 : i32
    %c0_i32_0 = arith.constant 0 : i32
    %c0_i32_1 = arith.constant 0 : i32
    return %c0_i32, %c0_i32_0 : i32, i32
  }
  func.func @transform_5(%arg0: i32) -> (i32, i32) {
    %c0_i32 = arith.constant 0 : i32
    %c0_i32_0 = arith.constant 0 : i32
    %c0_i32_1 = arith.constant 0 : i32
    return %c0_i32, %c0_i32_0 : i32, i32
  }
  func.func @transform_6(%arg0: i32) -> (i32, i32) {
    %c0_i32 = arith.constant 0 : i32
    %c0_i32_0 = arith.constant 0 : i32
    %c0_i32_1 = arith.constant 0 : i32
    return %c0_i32, %c0_i32_0 : i32, i32
  }
  func.func @transform_7(%arg0: i32) -> (i32, i32) {
    %c0_i32 = arith.constant 0 : i32
    %c0_i32_0 = arith.constant 0 : i32
    return %arg0, %c0_i32 : i32, i32
  }
}

</mosaic_0001>

<bundles_post_ra>
// kernel: tpu_custom_call.1
= control target key start
LH: loop header
LB: loop body
LE: loop exit
PB: predicated region body
PF: predicated region fallthrough
CT: control target
= control target key end

     0   :  { %12 = vsyncpa [#allocation3], 0  ;;  %s839_s0 = inlined_call_operand.hbm [shape: f32[8,32], index: 0, kind: input, shape index: {}]   ;;  %s840_s1 = inlined_call_operand.hbm [shape: f32[32,64], index: 1, kind: input, shape index: {}]   ;;  %s841_s2 = inlined_call_operand.vmem [shape: f32[1,64], index: 2, kind: input, shape index: {}]   ;;  %s842_s3 = inlined_call_operand.hbm [shape: f32[64,64], index: 3, kind: input, shape index: {}]   ;;  %s843_s4 = inlined_call_operand.vmem [shape: f32[1,64], index: 4, kind: input, shape index: {}]   ;;  %s844_s5 = inlined_call_operand.hbm [shape: f32[64,256], index: 5, kind: input, shape index: {}]   ;;  %s845_s6 = inlined_call_operand.vmem [shape: f32[1,256], index: 6, kind: input, shape index: {}]   ;;  %s846_s7 = inlined_call_operand.hbm [shape: f32[8,256], index: 7, kind: output, shape index: {}]  }
   0x1   :  { %13 = vsyncpa [#allocation6], 0 }
   0x2   :  { %14 = vsyncpa [#allocation9], 0 }
   0x3   :  { %15 = vsyncpa [#allocation4], 0 }
   0x4   :  { %20 = vsyncadd [#allocation3], 128  ;;  %s686_s24 = smov [#allocation5]   ;;  %s687_s26 = smov [#allocation2]  }
   0x5   :  { %s33_s25 = sshll.u32 %s686_s24, 4  ;;  %s21_s27 = sshll.u32 %s687_s26, 4  ;;  %s34_s25 = int_to_ptr.vmem [resolvable:$true] %s33_s25  ;;  %s736_s27 = int_to_ptr.vmem [resolvable:$true] %s21_s27 }
   0x6   :  { %s568_s30 = scalar_lea.hbm %s840_s1, 512 }
   0x7   :  { %p569_p0 = scmp.ne.s32.totalorder %s840_s1, %s568_s30  ;;  %p572_p1 = scmp.lt.u32.totalorder %s568_s30, %s840_s1 }
   0x9   :  { %p574_p2 = pnand %p572_p1, %p569_p0 }
   0xb   :  { %577 = shalt.err (!%p574_p2)
}
   0xc   :  { %s578_s12 = scalar_lea.vmem %s34_s25, 512  ;;  %p583_p4 = scmp.lt.s32.totalorder %s34_s25, %s34_s25 }
   0xd   :  { %p579_p3 = scmp.ne.s32.totalorder %s34_s25, %s578_s12  ;;  %p584_p5 = scmp.lt.s32.totalorder %s578_s12, %s578_s12 }
   0xf   :  { %p585_p6 = por %p584_p5, %p583_p4 }
  0x11   :  { %p586_p7 = pnand %p585_p6, %p579_p3 }
  0x13   :  { %589 = shalt.err (!%p586_p7)
}
  0x14   :  { %s688_s13 = smov 128   ;;  %s689_s14 = smov 8  }
  0x15   :  { %39 = dma.hbm_to_vmem [thread:$0]  %s840_s1, 512, %s34_s25, [#allocation6], %s688_s13, %s688_s13, %s689_s14  }
  0x16   :  { %s590_s19 = scalar_lea.hbm %s839_s0, 128 }
  0x17   :  { %p591_p8 = scmp.ne.s32.totalorder %s839_s0, %s590_s19  ;;  %p594_p9 = scmp.lt.u32.totalorder %s590_s19, %s839_s0 }
  0x19   :  { %p596_p10 = pnand %p594_p9, %p591_p8 }
  0x1b   :  { %599 = shalt.err (!%p596_p10)
}
  0x1c   :  { %s600_s24 = scalar_lea.vmem %s736_s27, 128  ;;  %s604_s1 = scalar_lea.vmem %s736_s27, 256 }
  0x1d   :  { %p601_p11 = scmp.ne.s32.totalorder %s736_s27, %s600_s24  ;;  %p605_p12 = scmp.lt.s32.totalorder %s736_s27, %s736_s27 }
  0x1e   :  { %p606_p13 = scmp.lt.s32.totalorder %s604_s1, %s600_s24 }
  0x20   :  { %p607_p0 = por %p606_p13, %p605_p12 }
  0x22   :  { %p608_p1 = pnand %p607_p0, %p601_p11 }
  0x24   :  { %611 = shalt.err (!%p608_p1)
}
  0x25   :  { %27 = dma.hbm_to_vmem [thread:$0]  %s839_s0, 128, %s736_s27, [#allocation3], %s688_s13, %s688_s13, %s689_s14  }
  0x26   :  { %s690_s28 = smov [#allocation7]   ;;  %s691_s30 = smov [#allocation8]  }
  0x27   :  { %s47_s29 = sshll.u32 %s690_s28, 4  ;;  %s61_s8 = sshll.u32 %s691_s30, 4  ;;  %s48_s29 = int_to_ptr.vmem [resolvable:$true] %s47_s29  ;;  %s774_s8 = int_to_ptr.vmem [resolvable:$true] %s61_s8 }
  0x28   :  { %s612_s11 = scalar_lea.hbm %s842_s3, 1024 }
  0x29   :  { %p613_p2 = scmp.ne.s32.totalorder %s842_s3, %s612_s11  ;;  %p616_p3 = scmp.lt.u32.totalorder %s612_s11, %s842_s3 }
  0x2b   :  { %p618_p4 = pnand %p616_p3, %p613_p2 }
  0x2d   :  { %621 = shalt.err (!%p618_p4)
}
  0x2e   :  { %s622_s0 = scalar_lea.vmem %s48_s29, 1024  ;;  %p627_p6 = scmp.lt.s32.totalorder %s48_s29, %s48_s29 }
  0x2f   :  { %p623_p5 = scmp.ne.s32.totalorder %s48_s29, %s622_s0  ;;  %p628_p7 = scmp.lt.s32.totalorder %s622_s0, %s622_s0 }
  0x31   :  { %p629_p8 = por %p628_p7, %p627_p6 }
  0x33   :  { %p630_p9 = pnand %p629_p8, %p623_p5 }
  0x35   :  { %633 = shalt.err (!%p630_p9)
}
  0x36   :  { %53 = dma.hbm_to_vmem [thread:$0]  %s842_s3, 1024, %s48_s29, [#allocation6], %s688_s13, %s688_s13, %s689_s14  }
  0x37   :  { %s634_s21 = scalar_lea.hbm %s844_s5, 2048 }
  0x38   :  { %p635_p10 = scmp.ne.s32.totalorder %s844_s5, %s634_s21  ;;  %p638_p11 = scmp.lt.u32.totalorder %s634_s21, %s844_s5 }
  0x3a   :  { %p640_p12 = pnand %p638_p11, %p635_p10 }
  0x3c   :  { %643 = shalt.err (!%p640_p12)
}
  0x3d   :  { %s644_s25 = scalar_lea.vmem %s774_s8, 2048  ;;  %p649_p0 = scmp.lt.s32.totalorder %s774_s8, %s774_s8 }
  0x3e   :  { %p645_p13 = scmp.ne.s32.totalorder %s774_s8, %s644_s25  ;;  %p650_p1 = scmp.lt.s32.totalorder %s644_s25, %s644_s25 }
  0x40   :  { %p651_p2 = por %p650_p1, %p649_p0 }
  0x42   :  { %p652_p3 = pnand %p651_p2, %p645_p13 }
  0x44   :  { %655 = shalt.err (!%p652_p3)
}
  0x45   :  { %s692_s3 = smov 256   ;;  %s693_s13 = smov 16  }
  0x46   :  { %67 = dma.hbm_to_vmem [thread:$0]  %s844_s5, 2048, %s774_s8, [#allocation9], %s692_s3, %s692_s3, %s693_s13  }
  0x47   :  { %678 = dma.done.wait [#allocation3], 256  }
  0x48   :  { %679 = vsyncadd [#allocation3], 4294967040 }
  0x49   :  { %680 = dma.done.wait [#allocation6], 1536  }
  0x4a   :  { %681 = vsyncadd [#allocation6], 4294965760 }
  0x4b   :  { %682 = dma.done.wait [#allocation9], 2048  }
  0x4c   :  { %683 = vsyncadd [#allocation9], 4294965248  ;;  %vm95_vm0 = vcmask 261120   ;;  %v84_v0 = vld [vmem:[#allocation5] sm:$0xff]  ;;  %v85_v1 = vld [vmem:[#allocation5 + $0x8] sm:$0xff]  ;;  %vm194_vm1 = vcmask 523264   ;;  %v296_v59 = vlaneseq }
  0x4d   :  { %v86_v2 = vld [vmem:[#allocation5 + $0x10] sm:$0xff]  ;;  %v498_v3 = vpack.c.bf16 %v85_v1, %v84_v0  ;;  %v87_v4 = vld [vmem:[#allocation5 + $0x18] sm:$0xff]  ;;  %v179_v8 = vld [vmem:[#allocation7] sm:$0xff]  ;;  %v694_v46 = vmov 0.0  }
  0x4e   :  { %v82_v5 = vld [vmem:[#allocation2] sm:$0xff]  ;;  %v502_v6 = vpack.c.bf16 %v87_v4, %v86_v2  ;;  %v83_v7 = vld [vmem:[#allocation2 + $0x8] sm:$0xff]  ;;  %v180_v9 = vld [vmem:[#allocation7 + $0x8] sm:$0xff]  ;;  %376 = vmatprep.mubr.f32.mxu0 %v694_v46  ;;  %v297_v60 = vshrl.u32 %v296_v59, 7 }
  0x4f   :  { %476 = vmatprep.mubr.msk.f32.mxu1 %vm95_vm0, %v82_v5  ;;  %499 = vmatprep.subr.bf16.mxu1 %v498_v3  ;;  %v506_v10 = vpack.c.bf16 %v180_v9, %v179_v8  ;;  %v181_v11 = vld [vmem:[#allocation7 + $0x10] sm:$0xff]  ;;  %v182_v12 = vld [vmem:[#allocation7 + $0x18] sm:$0xff]  ;;  %v183_v14 = vld [vmem:[#allocation7 + $0x20] sm:$0xff] }
  0x50   :  { %501 = vmatpush3.bf16.msra.mxu1 %v498_v3  ;;  %v510_v13 = vpack.c.bf16 %v182_v12, %v181_v11  ;;  %v184_v15 = vld [vmem:[#allocation7 + $0x28] sm:$0xff]  ;;  %v185_v16 = vld [vmem:[#allocation7 + $0x30] sm:$0xff]  ;;  %v186_v18 = vld [vmem:[#allocation7 + $0x38] sm:$0xff]  ;;  %v298_v61 = vsub.s32 0, %v297_v60  ;;  %v302_v63 = vsub.s32 1, %v297_v60 }
  0x51   :  { %503 = vmatprep.subr.bf16.mxu1 %v502_v6  ;;  %v514_v17 = vpack.c.bf16 %v184_v15, %v183_v14  ;;  %v518_v19 = vpack.c.bf16 %v186_v18, %v185_v16  ;;  %v279_v20 = vld [vmem:[#allocation8 + $0x8] sm:$0xff]  ;;  %v281_v21 = vld [vmem:[#allocation8 + $0x18] sm:$0xff]  ;;  %v444_v23 = vld [vmem:[%s841_s2] ss:$0 sm:$0xff] }
  0x52   :  { %v522_v22 = vpack.c.bf16 %v281_v21, %v279_v20  ;;  %v278_v30 = vld [vmem:[#allocation8] sm:$0xff]  ;;  %v280_v31 = vld [vmem:[#allocation8 + $0x10] sm:$0xff]  ;;  %v283_v33 = vld [vmem:[#allocation8 + $0x28] sm:$0xff] }
  0x53   :  { %v524_v32 = vpack.c.bf16 %v280_v31, %v278_v30  ;;  %v285_v34 = vld [vmem:[#allocation8 + $0x38] sm:$0xff]  ;;  %v282_v36 = vld [vmem:[#allocation8 + $0x20] sm:$0xff]  ;;  %v284_v37 = vld [vmem:[#allocation8 + $0x30] sm:$0xff] }
  0x54   :  { %505 = vmatpush3.bf16.msra.mxu1 %v502_v6  ;;  %523 = vmatprep.subr.bf16.mxu0 %v522_v22  ;;  %v526_v35 = vpack.c.bf16 %v285_v34, %v283_v33  ;;  %v528_v38 = vpack.c.bf16 %v284_v37, %v282_v36  ;;  %v287_v39 = vld [vmem:[#allocation8 + $0x48] sm:$0xff]  ;;  %v289_v40 = vld [vmem:[#allocation8 + $0x58] sm:$0xff]  ;;  %v286_v41 = vld [vmem:[#allocation8 + $0x40] sm:$0xff] }
  0x55   :  { %507 = vmatprep.subr.bf16.mxu1 %v506_v10  ;;  %525 = vmatpush1.bf16.msra.mxu0 %v524_v32  ;;  %v530_v42 = vpack.c.bf16 %v289_v40, %v287_v39  ;;  %v288_v43 = vld [vmem:[#allocation8 + $0x50] sm:$0xff]  ;;  %v291_v44 = vld [vmem:[#allocation8 + $0x68] sm:$0xff]  ;;  %v293_v45 = vld [vmem:[#allocation8 + $0x78] sm:$0xff] }
  0x56   :  { %527 = vmatprep.subr.bf16.mxu0 %v526_v35  ;;  %v532_v47 = vpack.c.bf16 %v288_v43, %v286_v41  ;;  %v534_v48 = vpack.c.bf16 %v293_v45, %v291_v44  ;;  %v290_v49 = vld [vmem:[#allocation8 + $0x60] sm:$0xff]  ;;  %v292_v50 = vld [vmem:[#allocation8 + $0x70] sm:$0xff] }
  0x57   :  { %477 = vmatmul.mubr.msk.f32.vlgmr.msra.gmra.mrb[0].mxu1 %vm95_vm0, %v83_v7  ;;  %v536_v51 = vpack.c.bf16 %v292_v50, %v290_v49  ;;  %v447_v52 = vld [vmem:[%s843_s4] ss:$0 sm:$0xff] }
  0x58   :  { %509 = vmatpush3.bf16.msra.mxu1 %v506_v10  ;;  %v294_v62 = vld [vmem:[%s845_s6] sm:$0x3] }
  0x59   :  { %511 = vmatprep.subr.bf16.mxu1 %v510_v13  ;;  %529 = vmatpush1.bf16.msra.mxu0 %v528_v38  ;;  %v299_v0 = vrot.slane %v294_v62, %v298_v61  ;;  %v303_v1 = vrot.slane %v294_v62, %v302_v63 }
  0x5a   :  { %531 = vmatprep.subr.bf16.mxu0 %v530_v42 }
  0x5c   :  { %513 = vmatpush3.bf16.msra.mxu1 %v510_v13 }
  0x5d   :  { %515 = vmatprep.subr.bf16.mxu1 %v514_v17  ;;  %533 = vmatpush1.bf16.msra.mxu0 %v532_v47 }
  0x5e   :  { %535 = vmatprep.subr.bf16.mxu0 %v534_v48 }
  0x60   :  { %517 = vmatpush3.bf16.msra.mxu1 %v514_v17 }
  0x61   :  { %519 = vmatprep.subr.bf16.mxu1 %v518_v19  ;;  %537 = vmatpush1.bf16.msra.mxu0 %v536_v51 }
  0x64   :  { %521 = vmatpush3.bf16.msra.mxu1 %v518_v19 }
 0x12a   :  { %v478_v24 = vpop.f32.mrb[0].mxu1 }
 0x12b   :  { %v174_v25 = vadd.f32 %v478_v24, %v444_v23  ;;  %v168_v26 = vpop.f32.mrb[1].mxu1 }
 0x12c   :  { %v169_v27 = vadd.f32 %v444_v23, %v168_v26 }
 0x12e   :  { %548 = vtanh.f32 %v169_v27 }
 0x12f   :  { %550 = vtanh.f32 %v174_v25 }
 0x138   :  { %v549_v28 = vpop.eup %548 }
 0x139   :  { %v551_v29 = vpop.eup %550  ;;  %495 = vmatprep.mubr.msk.f32.mxu1 %vm194_vm1, %v549_v28 }
 0x13a   :  { %496 = vmatmul.mubr.msk.f32.vlgmr.msra.gmra.mrb[2].mxu1 %vm194_vm1, %v551_v29 }
 0x20d   :  { %v497_v53 = vpop.f32.mrb[2].mxu1 }
 0x20e   :  { %v267_v54 = vpop.f32.mrb[3].mxu1  ;;  %v273_v56 = vadd.f32 %v497_v53, %v447_v52 }
 0x20f   :  { %v268_v55 = vadd.f32 %v447_v52, %v267_v54 }
 0x211   :  { %552 = vtanh.f32 %v268_v55 }
 0x212   :  { %554 = vtanh.f32 %v273_v56 }
 0x21b   :  { %v553_v57 = vpop.eup %552 }
 0x21c   :  { %450 = vmatmul.mubr.msk.f32.vlgmr.msra.gmra.mrb[0].mxu0 %vm194_vm1, %v553_v57  ;;  %v555_v58 = vpop.eup %554 }
 0x21d   :  { %382 = vmatprep.mubr.f32.mxu0 %v694_v46 }
 0x220   :  { %451 = vmatmul.mubr.msk.f32.gmra.mrb[2].mxu0 %vm194_vm1, %v555_v58 }
 0x2ef   :  { %v378_v2 = vpop.f32.mrb[0].mxu0 }
 0x2f0   :  { %v379_v3 = vadd.f32 %v378_v2, %v299_v0  ;;  %v380_v4 = vpop.f32.mrb[1].mxu0 }
 0x2f1   :  { %v381_v5 = vadd.f32 %v380_v4, %v303_v1 }
 0x2f2   :  { %556 = vtanh.f32 %v379_v3 }
 0x2f3   :  { %v395_v6 = vand.u32 2147483647, %v381_v5  ;;  %v384_v7 = vpop.f32.mrb[2].mxu0  ;;  %v393_v30 = vmax.f32 %v381_v5, 0.0 }
 0x2f4   :  { %v385_v8 = vadd.f32 %v384_v7, %v299_v0  ;;  %v386_v9 = vpop.f32.mrb[3].mxu0 }
 0x2f5   :  { %v397_v10 = vsub.f32 0.0, %v395_v6  ;;  %v387_v11 = vadd.f32 %v386_v9, %v303_v1 }
 0x2f6   :  { %558 = vtanh.f32 %v385_v8 }
 0x2f7   :  { %v399_v12 = vmul.f32 1.442695, %v397_v10  ;;  %v396_v13 = vand.u32 2147483647, %v387_v11  ;;  %v394_v37 = vmax.f32 %v387_v11, 0.0 }
 0x2f9   :  { %560 = vpow2.f32 %v399_v12  ;;  %v398_v14 = vsub.f32 0.0, %v396_v13 }
 0x2fb   :  { %v401_v15 = vmul.f32 1.442695, %v398_v14 }
 0x2fc   :  { %v557_v16 = vpop.eup %556 }
 0x2fd   :  { %391 = vst [vmem:[#allocation10] sm:$0xff] %v557_v16  ;;  %562 = vpow2.f32 %v401_v15 }
 0x300   :  { %v559_v17 = vpop.eup %558 }
 0x301   :  { %392 = vst [vmem:[#allocation10 + $0x10] sm:$0xff] %v559_v17 }
 0x303   :  { %v561_v18 = vpop.eup %560 }
 0x304   :  { %v403_v19 = vadd.f32 1.0, %v561_v18  ;;  %v406_v22 = vmul.f32 -0.5, %v561_v18  ;;  %v409_v25 = vand.u32 2147483647, %v561_v18 }
 0x306   :  { %564 = vlog2.f32 %v403_v19  ;;  %v407_v23 = vadd.f32 1.0, %v406_v22  ;;  %vm410_vm2 = vcmp.lt.f32.partialorder %v409_v25, 0.0004427343 }
 0x307   :  { %v563_v20 = vpop.eup %562 }
 0x308   :  { %v412_v21 = vadd.f32 1.0, %v563_v20  ;;  %v415_v24 = vmul.f32 -0.5, %v563_v20  ;;  %v408_v28 = vmul.f32 %v561_v18, %v407_v23  ;;  %v418_v31 = vand.u32 2147483647, %v563_v20 }
 0x30a   :  { %566 = vlog2.f32 %v412_v21  ;;  %v416_v29 = vadd.f32 1.0, %v415_v24  ;;  %vm419_vm3 = vcmp.lt.f32.partialorder %v418_v31, 0.0004427343 }
 0x30c   :  { %v417_v36 = vmul.f32 %v563_v20, %v416_v29 }
 0x310   :  { %v565_v26 = vpop.eup %564 }
 0x311   :  { %v405_v27 = vmul.f32 0.6931472, %v565_v26 }
 0x313   :  { %v411_v32 = vsel %vm410_vm2, %v408_v28, %v405_v27 }
 0x314   :  { %v567_v33 = vpop.eup %566  ;;  %v421_v34 = vadd.f32 %v411_v32, %v393_v30 }
 0x315   :  { %v414_v35 = vmul.f32 0.6931472, %v567_v33 }
 0x316   :  { %423 = vst [vmem:[#allocation10 + $0x8] sm:$0xff] %v421_v34 }
 0x317   :  { %v420_v38 = vsel %vm419_vm3, %v417_v36, %v414_v35 }
 0x318   :  { %v422_v39 = vadd.f32 %v420_v38, %v394_v37 }
 0x31a   :  { %424 = vst [vmem:[#allocation10 + $0x18] sm:$0xff] %v422_v39 }
 0x31b   :  { %429 = vsyncadd [#allocation4], 256  ;;  %s695_s4 = smov [#allocation10]  }
 0x31c   :  { %s430_s6 = sshll.u32 %s695_s4, 4  ;;  %s431_s6 = int_to_ptr.vmem [resolvable:$true] %s430_s6 }
 0x31d   :  { %s656_s9 = scalar_lea.vmem %s431_s6, 256  ;;  %s660_s10 = scalar_lea.vmem %s431_s6, 512 }
 0x31e   :  { %p657_p4 = scmp.ne.s32.totalorder %s431_s6, %s656_s9  ;;  %p661_p5 = scmp.lt.s32.totalorder %s431_s6, %s431_s6 }
 0x31f   :  { %p662_p6 = scmp.lt.s32.totalorder %s660_s10, %s656_s9 }
 0x321   :  { %p663_p7 = por %p662_p6, %p661_p5 }
 0x323   :  { %p664_p8 = pnand %p663_p7, %p657_p4 }
 0x325   :  { %667 = shalt.err (!%p664_p8)
}
 0x326   :  { %s668_s15 = scalar_lea.hbm %s846_s7, 256 }
 0x327   :  { %p669_p9 = scmp.ne.s32.totalorder %s846_s7, %s668_s15  ;;  %p672_p10 = scmp.lt.u32.totalorder %s668_s15, %s846_s7 }
 0x329   :  { %p674_p11 = pnand %p672_p10, %p669_p9 }
 0x32b   :  { %677 = shalt.err (!%p674_p11)
}
 0x32c   :  { %436 = dma.vmem_to_hbm [thread:$0]  %s431_s6, 256, %s846_s7, [#allocation4], %s692_s3, %s692_s3, %s693_s13  }
 0x32d   :  { %684 = dma.done.wait [#allocation4], 512  }
 0x32e   :  { %685 = vsyncadd [#allocation4], 4294966784 }
 0x32f   :  { %440 = vsyncpa [#allocation3], 1 }
 0x330   :  { %441 = vsyncpa [#allocation6], 1 }
 0x331   :  { %442 = vsyncpa [#allocation9], 1 }
 0x332   :  { %443 = vsyncpa [#allocation4], 1 }

</bundles_post_ra>
